<compile_context>
chip_gen: v7x
topology: tpu7x:2x2x1
jax: 0.10.0
libtpu: 0.0.40
codegen_flags: <defaults>
</compile_context>

<pallas_src>
import functools

import jax
import jax.numpy as jnp
from jax.experimental import pallas as pl
from jax.experimental.pallas import tpu as pltpu

IN_DIM = 28 * 28      # 784
H1 = 128
H2 = 64
OUT_DIM = 10

K_PAD = 896           # 7 * 128  (lane-aligned reduction dim for layer 1)
H2_PAD = 128          # lane-aligned hidden dim for layers 2/3
OUT_PAD = 128         # lane-dense output stores


def _round_up(x, m):
    return ((x + m - 1) // m) * m


def mlp_kernel(x_ref, w1_ref, b1_ref, w2_ref, b2_ref, w3_ref, b3_ref, o_ref):
    # Layer 1: (TB, 896)bf16 @ (896, 128)bf16 -> f32 acc, + bias, ReLU
    h1 = jnp.dot(x_ref[...], w1_ref[...], preferred_element_type=jnp.float32)
    h1 = jnp.maximum(h1 + b1_ref[...], 0.0)
    # Layer 2: (TB, 128)bf16 @ (128, 128)bf16 -> f32 acc, + bias, ReLU
    h2 = jnp.dot(h1.astype(jnp.bfloat16), w2_ref[...],
                 preferred_element_type=jnp.float32)
    h2 = jnp.maximum(h2 + b2_ref[...], 0.0)
    # Layer 3: (TB, 128)bf16 @ (128, 128)bf16 -> f32 acc, + bias (no activation)
    out = jnp.dot(h2.astype(jnp.bfloat16), w3_ref[...],
                  preferred_element_type=jnp.float32)
    o_ref[...] = (out + b3_ref[...]).astype(o_ref.dtype)


@functools.partial(jax.jit, static_argnames=("block_b",))
def redes_forward(x, params, block_b=512):
    """x: (B, 1, 28, 28) or (B, 28, 28) float32 (NCHW like PyTorch)."""
    w1, b1, w2, b2, w3, b3 = params
    B = x.shape[0]
    x2d = x.reshape(B, -1)                              # torch.flatten(x, 1)
    assert x2d.shape[1] == IN_DIM

    # Effective batch tile: lane/sublane friendly, no bigger than the padded batch.
    eff_block = min(block_b, _round_up(B, 128))
    padded_b = _round_up(B, eff_block)

    # Pad & cast activations: (padded_b, 896) bf16. Zero pad rows/cols.
    x2d = jnp.pad(x2d, ((0, padded_b - B), (0, K_PAD - IN_DIM)))
    x_bf = x2d.astype(jnp.bfloat16)

    # Pad weights to lane multiples (zero pad => numerically identical), bf16.
    w1p = jnp.pad(w1, ((0, K_PAD - IN_DIM), (0, 0))).astype(jnp.bfloat16)
    b1p = b1.astype(jnp.float32)                                        # (1, 128)
    w2p = jnp.pad(w2, ((0, 0), (0, H2_PAD - H2))).astype(jnp.bfloat16)  # (128, 128)
    b2p = jnp.pad(b2, ((0, 0), (0, H2_PAD - H2))).astype(jnp.float32)   # (1, 128)
    w3p = jnp.pad(w3, ((0, H2_PAD - H2),
                       (0, OUT_PAD - OUT_DIM))).astype(jnp.bfloat16)    # (128, 128)
    b3p = jnp.pad(b3, ((0, 0), (0, OUT_PAD - OUT_DIM))).astype(jnp.float32)

    grid = (padded_b // eff_block,)

    flops = 2 * padded_b * (K_PAD * H1 + H1 * H2_PAD + H2_PAD * OUT_PAD)
    bytes_accessed = (padded_b * K_PAD * 2 + padded_b * OUT_PAD * 4
                      + (K_PAD * H1 + H1 * H2_PAD + H2_PAD * OUT_PAD) * 2
                      + (H1 + H2_PAD + OUT_PAD) * 4)

    out = pl.pallas_call(
        mlp_kernel,
        out_shape=jax.ShapeDtypeStruct((padded_b, OUT_PAD), jnp.float32),
        grid_spec=pl.GridSpec(
            grid=grid,
            in_specs=[
                # batch-tiled activations
                pl.BlockSpec((eff_block, K_PAD), lambda i: (i, 0)),
                # weights / biases: full arrays, same block every grid step
                pl.BlockSpec((K_PAD, H1), lambda i: (0, 0)),
                pl.BlockSpec((1, H1), lambda i: (0, 0)),
                pl.BlockSpec((H1, H2_PAD), lambda i: (0, 0)),
                pl.BlockSpec((1, H2_PAD), lambda i: (0, 0)),
                pl.BlockSpec((H2_PAD, OUT_PAD), lambda i: (0, 0)),
                pl.BlockSpec((1, OUT_PAD), lambda i: (0, 0)),
            ],
            out_specs=pl.BlockSpec((eff_block, OUT_PAD), lambda i: (i, 0)),
        ),
        compiler_params=pltpu.CompilerParams(
            dimension_semantics=("parallel",),
        ),
        cost_estimate=pl.CostEstimate(
            flops=flops, transcendentals=0, bytes_accessed=bytes_accessed),
    )(x_bf, w1p, b1p, w2p, b2p, w3p, b3p)

    return out[:B, :OUT_DIM]


def init_params(key):
    """Deterministic init matching PyTorch Linear shapes (stored transposed)."""
    k1, k2, k3, k4, k5, k6 = jax.random.split(key, 6)

    def uniform(k, shape, fan_in):
        bound = 1.0 / jnp.sqrt(fan_in)
        return jax.random.uniform(k, shape, jnp.float32, -bound, bound)

    w1 = uniform(k1, (IN_DIM, H1), IN_DIM)   # figas1.weight.T
    b1 = uniform(k2, (1, H1), IN_DIM)        # figas1.bias
    w2 = uniform(k3, (H1, H2), H1)           # figas2.weight.T
    b2 = uniform(k4, (1, H2), H1)            # figas2.bias
    w3 = uniform(k5, (H2, OUT_DIM), H2)      # figas3.weight.T
    b3 = uniform(k6, (1, OUT_DIM), H2)       # figas3.bias
    return (w1, b1, w2, b2, w3, b3)


def reference_forward_f32(x, params):
    """Pure f32 reference (matches the PyTorch module exactly)."""
    w1, b1, w2, b2, w3, b3 = params
    x2d = x.reshape(x.shape[0], -1)
    h1 = jnp.maximum(x2d @ w1 + b1, 0.0)
    h2 = jnp.maximum(h1 @ w2 + b2, 0.0)
    return h2 @ w3 + b3


def reference_forward_bf16(x, params):
    """Reference mirroring the kernel's bf16-input / f32-accumulate arithmetic."""
    w1, b1, w2, b2, w3, b3 = params
    q = lambda a: a.astype(jnp.bfloat16).astype(jnp.float32)
    x2d = x.reshape(x.shape[0], -1)
    h1 = jnp.maximum(q(x2d) @ q(w1) + b1, 0.0)
    h2 = jnp.maximum(q(h1) @ q(w2) + b2, 0.0)
    return q(h2) @ q(w3) + b3


if __name__ == "__main__":
    key = jax.random.PRNGKey(0)
    kx, kp = jax.random.split(key)

    B = 8
    x = jax.random.normal(kx, (B, 1, 28, 28), jnp.float32)   # NCHW input
    params = init_params(kp)

    out = redes_forward(x, params)
    out = jax.block_until_ready(out)
    assert out.shape == (B, OUT_DIM)

    # Tight check against a reference with identical bf16 quantization.
    ref_q = reference_forward_bf16(x, params)
    assert jnp.allclose(out, ref_q, atol=5e-3, rtol=5e-3), "mismatch vs bf16 reference"

    # Loose check against the pure-f32 PyTorch-equivalent reference.
    ref_f32 = reference_forward_f32(x, params)
    assert jnp.allclose(out, ref_f32, atol=5e-2, rtol=5e-2), "mismatch vs f32 reference"

    print("KERNEL_OK")
</pallas_src>

<mosaic_0001>
module attributes {stable_mosaic.version = 11 : i64} {
  func.func @mlp_kernel(%arg0: i32, %arg1: memref<128x896xbf16, #tpu.memory_space<vmem>>, %arg2: memref<896x128xbf16, #tpu.memory_space<vmem>>, %arg3: memref<1x128xf32, #tpu.memory_space<vmem>>, %arg4: memref<128x128xbf16, #tpu.memory_space<vmem>>, %arg5: memref<1x128xf32, #tpu.memory_space<vmem>>, %arg6: memref<128x128xbf16, #tpu.memory_space<vmem>>, %arg7: memref<1x128xf32, #tpu.memory_space<vmem>>, %arg8: memref<128x128xf32, #tpu.memory_space<vmem>>) attributes {dimension_semantics = [#tpu.dimension_semantics<parallel>], iteration_bounds = array<i64: 1>, scalar_prefetch = 0 : i64, scratch_operands = 0 : i64, tpu.core_type = #tpu.core_type<tc>, window_params = [{transform_indices = @transform_0, window_bounds = array<i64: 128, 896>}, {pipeline_mode = #tpu.pipeline_mode<synchronous>, transform_indices = @transform_1, window_bounds = array<i64: 896, 128>}, {pipeline_mode = #tpu.pipeline_mode<synchronous>, transform_indices = @transform_2, window_bounds = array<i64: 1, 128>}, {pipeline_mode = #tpu.pipeline_mode<synchronous>, transform_indices = @transform_3, window_bounds = array<i64: 128, 128>}, {pipeline_mode = #tpu.pipeline_mode<synchronous>, transform_indices = @transform_4, window_bounds = array<i64: 1, 128>}, {pipeline_mode = #tpu.pipeline_mode<synchronous>, transform_indices = @transform_5, window_bounds = array<i64: 128, 128>}, {pipeline_mode = #tpu.pipeline_mode<synchronous>, transform_indices = @transform_6, window_bounds = array<i64: 1, 128>}, {transform_indices = @transform_7, window_bounds = array<i64: 128, 128>}]} {
    %c0 = arith.constant 0 : index
    %c0_0 = arith.constant 0 : index
    %0 = vector.load %arg1[%c0, %c0_0] : memref<128x896xbf16, #tpu.memory_space<vmem>>, vector<128x896xbf16>
    %c0_1 = arith.constant 0 : index
    %c0_2 = arith.constant 0 : index
    %1 = vector.load %arg2[%c0_1, %c0_2] : memref<896x128xbf16, #tpu.memory_space<vmem>>, vector<896x128xbf16>
    %cst = arith.constant dense<0.000000e+00> : vector<128x128xf32>
    %2 = tpu.matmul %0, %1, %cst {dimension_numbers = #tpu.dot_dimension_numbers<[1], [0], [0], [1], [0, 0, 1, 1], [], []>} : vector<128x896xbf16>, vector<896x128xbf16>, vector<128x128xf32> -> vector<128x128xf32>
    %c0_3 = arith.constant 0 : index
    %c0_4 = arith.constant 0 : index
    %3 = vector.load %arg3[%c0_3, %c0_4] : memref<1x128xf32, #tpu.memory_space<vmem>>, vector<1x128xf32>
    %4 = vector.broadcast %3 : vector<1x128xf32> to vector<128x128xf32>
    %5 = arith.addf %2, %4 : vector<128x128xf32>
    %cst_5 = arith.constant 0.000000e+00 : f32
    %6 = vector.broadcast %cst_5 : f32 to vector<128x128xf32>
    %7 = arith.maximumf %5, %6 : vector<128x128xf32>
    %8 = arith.truncf %7 : vector<128x128xf32> to vector<128x128xbf16>
    %c0_6 = arith.constant 0 : index
    %c0_7 = arith.constant 0 : index
    %9 = vector.load %arg4[%c0_6, %c0_7] : memref<128x128xbf16, #tpu.memory_space<vmem>>, vector<128x128xbf16>
    %cst_8 = arith.constant dense<0.000000e+00> : vector<128x128xf32>
    %10 = tpu.matmul %8, %9, %cst_8 {dimension_numbers = #tpu.dot_dimension_numbers<[1], [0], [0], [1], [0, 0, 1, 1], [], []>} : vector<128x128xbf16>, vector<128x128xbf16>, vector<128x128xf32> -> vector<128x128xf32>
    %c0_9 = arith.constant 0 : index
    %c0_10 = arith.constant 0 : index
    %11 = vector.load %arg5[%c0_9, %c0_10] : memref<1x128xf32, #tpu.memory_space<vmem>>, vector<1x128xf32>
    %12 = vector.broadcast %11 : vector<1x128xf32> to vector<128x128xf32>
    %13 = arith.addf %10, %12 : vector<128x128xf32>
    %cst_11 = arith.constant 0.000000e+00 : f32
    %14 = vector.broadcast %cst_11 : f32 to vector<128x128xf32>
    %15 = arith.maximumf %13, %14 : vector<128x128xf32>
    %16 = arith.truncf %15 : vector<128x128xf32> to vector<128x128xbf16>
    %c0_12 = arith.constant 0 : index
    %c0_13 = arith.constant 0 : index
    %17 = vector.load %arg6[%c0_12, %c0_13] : memref<128x128xbf16, #tpu.memory_space<vmem>>, vector<128x128xbf16>
    %cst_14 = arith.constant dense<0.000000e+00> : vector<128x128xf32>
    %18 = tpu.matmul %16, %17, %cst_14 {dimension_numbers = #tpu.dot_dimension_numbers<[1], [0], [0], [1], [0, 0, 1, 1], [], []>} : vector<128x128xbf16>, vector<128x128xbf16>, vector<128x128xf32> -> vector<128x128xf32>
    %c0_15 = arith.constant 0 : index
    %c0_16 = arith.constant 0 : index
    %19 = vector.load %arg7[%c0_15, %c0_16] : memref<1x128xf32, #tpu.memory_space<vmem>>, vector<1x128xf32>
    %20 = vector.broadcast %19 : vector<1x128xf32> to vector<128x128xf32>
    %21 = arith.addf %18, %20 : vector<128x128xf32>
    %c0_17 = arith.constant 0 : index
    %c0_18 = arith.constant 0 : index
    %22 = vector.load %arg8[%c0_17, %c0_18] : memref<128x128xf32, #tpu.memory_space<vmem>>, vector<128x128xf32>
    tpu.vector_store %arg8[%c0_17, %c0_18], %21 {strides = array<i32>} : memref<128x128xf32, #tpu.memory_space<vmem>>, vector<128x128xf32>,
    return
  }
  func.func @transform_0(%arg0: i32) -> (i32, i32) {
    %c0_i32 = arith.constant 0 : i32
    %c0_i32_0 = arith.constant 0 : i32
    return %arg0, %c0_i32 : i32, i32
  }
  func.func @transform_1(%arg0: i32) -> (i32, i32) {
    %c0_i32 = arith.constant 0 : i32
    %c0_i32_0 = arith.constant 0 : i32
    %c0_i32_1 = arith.constant 0 : i32
    return %c0_i32, %c0_i32_0 : i32, i32
  }
  func.func @transform_2(%arg0: i32) -> (i32, i32) {
    %c0_i32 = arith.constant 0 : i32
    %c0_i32_0 = arith.constant 0 : i32
    %c0_i32_1 = arith.constant 0 : i32
    return %c0_i32, %c0_i32_0 : i32, i32
  }
  func.func @transform_3(%arg0: i32) -> (i32, i32) {
    %c0_i32 = arith.constant 0 : i32
    %c0_i32_0 = arith.constant 0 : i32
    %c0_i32_1 = arith.constant 0 : i32
    return %c0_i32, %c0_i32_0 : i32, i32
  }
  func.func @transform_4(%arg0: i32) -> (i32, i32) {
    %c0_i32 = arith.constant 0 : i32
    %c0_i32_0 = arith.constant 0 : i32
    %c0_i32_1 = arith.constant 0 : i32
    return %c0_i32, %c0_i32_0 : i32, i32
  }
  func.func @transform_5(%arg0: i32) -> (i32, i32) {
    %c0_i32 = arith.constant 0 : i32
    %c0_i32_0 = arith.constant 0 : i32
    %c0_i32_1 = arith.constant 0 : i32
    return %c0_i32, %c0_i32_0 : i32, i32
  }
  func.func @transform_6(%arg0: i32) -> (i32, i32) {
    %c0_i32 = arith.constant 0 : i32
    %c0_i32_0 = arith.constant 0 : i32
    %c0_i32_1 = arith.constant 0 : i32
    return %c0_i32, %c0_i32_0 : i32, i32
  }
  func.func @transform_7(%arg0: i32) -> (i32, i32) {
    %c0_i32 = arith.constant 0 : i32
    %c0_i32_0 = arith.constant 0 : i32
    return %arg0, %c0_i32 : i32, i32
  }
}

</mosaic_0001>

<bundles_post_ra>
// kernel: redes_forward.1
= control target key start
LH: loop header
LB: loop body
LE: loop exit
PB: predicated region body
PF: predicated region fallthrough
CT: control target
= control target key end

     0   :  { %s2853_s1 = inlined_call_operand.vmem [shape: bf16[896,128], index: 1, kind: input, shape index: {}]   ;;  %s2854_s0 = inlined_call_operand.vmem [shape: bf16[128,896], index: 0, kind: input, shape index: {}]   ;;  %s2855_s3 = inlined_call_operand.vmem [shape: bf16[128,128], index: 3, kind: input, shape index: {}]   ;;  %s2856_s2 = inlined_call_operand.vmem [shape: f32[1,128], index: 2, kind: input, shape index: {}]   ;;  %s2857_s5 = inlined_call_operand.vmem [shape: bf16[128,128], index: 5, kind: input, shape index: {}]   ;;  %s2858_s4 = inlined_call_operand.vmem [shape: f32[1,128], index: 4, kind: input, shape index: {}]   ;;  %s2859_s6 = inlined_call_operand.vmem [shape: f32[1,128], index: 6, kind: input, shape index: {}]   ;;  %s2860_s7 = inlined_call_operand.vmem [shape: f32[128,128], index: 7, kind: output, shape index: {}]  }
   0x1   :  { %v2109_v0 = vld [vmem:[%s2853_s1 + $0x40] sm:$0xff]   ;;  %v2113_v4 = vld [vmem:[%s2853_s1 + $0x48] sm:$0xff]   ;;  %v2117_v8 = vld [vmem:[%s2853_s1 + $0x50] sm:$0xff]  }
   0x2   :  { %v2110_v1 = vld [vmem:[%s2853_s1] sm:$0xff]   ;;  %1757 = vmatprep.subr.bf16.mxu0 %v2109_v0  ;;  %v2114_v5 = vld [vmem:[%s2853_s1 + $0x8] sm:$0xff]   ;;  %v2118_v9 = vld [vmem:[%s2853_s1 + $0x10] sm:$0xff]  }
   0x3   :  { %v2111_v2 = vld [vmem:[%s2853_s1 + $0xc0] sm:$0xff]   ;;  %1758 = vmatpush3.bf16.msra.mxu0 %v2110_v1  ;;  %v2115_v6 = vld [vmem:[%s2853_s1 + $0xc8] sm:$0xff]   ;;  %v2119_v10 = vld [vmem:[%s2853_s1 + $0xd0] sm:$0xff]  }
   0x4   :  { %v2112_v3 = vld [vmem:[%s2853_s1 + $0x80] sm:$0xff]   ;;  %1821 = vmatprep.subr.bf16.mxu1 %v2111_v2  ;;  %1759 = vmatprep.subr.bf16.mxu0 %v2113_v4  ;;  %v2116_v7 = vld [vmem:[%s2853_s1 + $0x88] sm:$0xff]   ;;  %v2120_v11 = vld [vmem:[%s2853_s1 + $0x90] sm:$0xff]  }
   0x5   :  { %1822 = vmatpush3.bf16.msra.mxu1 %v2112_v3  ;;  %v2121_v12 = vld [vmem:[%s2853_s1 + $0x58] sm:$0xff]   ;;  %v2125_v16 = vld [vmem:[%s2853_s1 + $0x60] sm:$0xff]   ;;  %v2129_v20 = vld [vmem:[%s2853_s1 + $0x68] sm:$0xff]  }
   0x6   :  { %1823 = vmatprep.subr.bf16.mxu1 %v2115_v6  ;;  %v2122_v13 = vld [vmem:[%s2853_s1 + $0x18] sm:$0xff]   ;;  %v2126_v17 = vld [vmem:[%s2853_s1 + $0x20] sm:$0xff]   ;;  %v2130_v21 = vld [vmem:[%s2853_s1 + $0x28] sm:$0xff]  }
   0x7   :  { %1760 = vmatpush3.bf16.msra.mxu0 %v2114_v5  ;;  %v2123_v14 = vld [vmem:[%s2853_s1 + $0xd8] sm:$0xff]   ;;  %v2127_v18 = vld [vmem:[%s2853_s1 + $0xe0] sm:$0xff]   ;;  %v2131_v22 = vld [vmem:[%s2853_s1 + $0xe8] sm:$0xff]  }
   0x8   :  { %1761 = vmatprep.subr.bf16.mxu0 %v2117_v8  ;;  %v2124_v15 = vld [vmem:[%s2853_s1 + $0x98] sm:$0xff]   ;;  %v2128_v19 = vld [vmem:[%s2853_s1 + $0xa0] sm:$0xff]   ;;  %v2132_v23 = vld [vmem:[%s2853_s1 + $0xa8] sm:$0xff]  }
   0x9   :  { %1824 = vmatpush3.bf16.msra.mxu1 %v2116_v7  ;;  %v2133_v24 = vld [vmem:[%s2853_s1 + $0x70] sm:$0xff]   ;;  %v2137_v28 = vld [vmem:[%s2853_s1 + $0x78] sm:$0xff]   ;;  %v2142_v32 = vld [vmem:[%s2854_s0 + $0x4] ss:$28 sps:$4 sm:$0xff]  }
   0xa   :  { %1825 = vmatprep.subr.bf16.mxu1 %v2119_v10  ;;  %v2134_v25 = vld [vmem:[%s2853_s1 + $0x30] sm:$0xff]   ;;  %v2138_v29 = vld [vmem:[%s2853_s1 + $0x38] sm:$0xff]   ;;  %866 = vmatprep.mubr.bf16.mxu0 %v2142_v32  ;;  %v2144_v34 = vld [vmem:[%s2853_s1 + $0x140] sm:$0xff]  }
   0xb   :  { %1762 = vmatpush3.bf16.msra.mxu0 %v2118_v9  ;;  %v2135_v26 = vld [vmem:[%s2853_s1 + $0xf0] sm:$0xff]   ;;  %v2139_v30 = vld [vmem:[%s2853_s1 + $0xf8] sm:$0xff]   ;;  %v2145_v35 = vld [vmem:[%s2854_s0 + $0x8] ss:$28 sps:$4 sm:$0xff]  }
   0xc   :  { %1763 = vmatprep.subr.bf16.mxu0 %v2121_v12  ;;  %v2136_v27 = vld [vmem:[%s2853_s1 + $0xb0] sm:$0xff]   ;;  %v2140_v31 = vld [vmem:[%s2854_s0] ss:$28 sps:$4 sm:$0xff]   ;;  %v2147_v36 = vld [vmem:[%s2854_s0 + $0xc] ss:$28 sps:$4 sm:$0xff]  }
   0xd   :  { %1826 = vmatpush3.bf16.msra.mxu1 %v2120_v11  ;;  %v2143_v33 = vld [vmem:[%s2853_s1 + $0xb8] sm:$0xff]   ;;  %v2148_v37 = vld [vmem:[%s2853_s1 + $0x100] sm:$0xff]   ;;  %963 = vmatprep.mubr.bf16.mxu1 %v2147_v36  ;;  %v2152_v40 = vld [vmem:[%s2853_s1 + $0x148] sm:$0xff]  }
   0xe   :  { %1827 = vmatprep.subr.bf16.mxu1 %v2123_v14  ;;  %v2149_v38 = vld [vmem:[%s2854_s0 + $0x3c] ss:$28 sps:$4 sm:$0xff]   ;;  %v2153_v41 = vld [vmem:[%s2854_s0 + $0x44] ss:$28 sps:$4 sm:$0xff]   ;;  %v2155_v42 = vld [vmem:[%s2853_s1 + $0x108] sm:$0xff]  }
   0xf   :  { %1764 = vmatpush3.bf16.msra.mxu0 %v2122_v13  ;;  %v2151_v39 = vld [vmem:[%s2854_s0 + $0x38] ss:$28 sps:$4 sm:$0xff]   ;;  %v2156_v43 = vld [vmem:[%s2854_s0 + $0x40] ss:$28 sps:$4 sm:$0xff]   ;;  %v2159_v48 = vld [vmem:[%s2854_s0 + $0x70] ss:$28 sps:$4 sm:$0xff]  }
  0x10   :  { %1765 = vmatprep.subr.bf16.mxu0 %v2125_v16  ;;  %v2157_v44 = vld [vmem:[%s2854_s0 + $0x74] ss:$28 sps:$4 sm:$0xff]   ;;  %v2161_v46 = vld [vmem:[%s2854_s0 + $0x7c] ss:$28 sps:$4 sm:$0xff]   ;;  %v2165_v49 = vld [vmem:[%s2854_s0 + $0xac] ss:$28 sps:$4 sm:$0xff]  }
  0x11   :  { %1828 = vmatpush3.bf16.msra.mxu1 %v2124_v15  ;;  %v2160_v45 = vld [vmem:[%s2853_s1 + $0x150] sm:$0xff]   ;;  %v2168_v50 = vld [vmem:[%s2853_s1 + $0x158] sm:$0xff]   ;;  %v2176_v54 = vld [vmem:[%s2853_s1 + $0x160] sm:$0xff]  }
  0x12   :  { %1829 = vmatprep.subr.bf16.mxu1 %v2127_v18  ;;  %v2163_v47 = vld [vmem:[%s2853_s1 + $0x110] sm:$0xff]   ;;  %v2171_v52 = vld [vmem:[%s2853_s1 + $0x118] sm:$0xff]   ;;  %v2167_v55 = vld [vmem:[%s2854_s0 + $0xa8] ss:$28 sps:$4 sm:$0xff]  }
  0x13   :  { %1766 = vmatpush3.bf16.msra.mxu0 %v2126_v17  ;;  %v2164_v51 = vld [vmem:[%s2854_s0 + $0x78] ss:$28 sps:$4 sm:$0xff]   ;;  %v2179_v56 = vld [vmem:[%s2853_s1 + $0x120] sm:$0xff]   ;;  %v2172_v59 = vld [vmem:[%s2854_s0 + $0xb0] ss:$28 sps:$4 sm:$0xff]  }
  0x14   :  { %1767 = vmatprep.subr.bf16.mxu0 %v2129_v20  ;;  %v2169_v53 = vld [vmem:[%s2854_s0 + $0xb4] ss:$28 sps:$4 sm:$0xff]   ;;  %v2173_v57 = vld [vmem:[%s2854_s0 + $0xe4] ss:$28 sps:$4 sm:$0xff]   ;;  %v2177_v60 = vld [vmem:[%s2854_s0 + $0xec] ss:$28 sps:$4 sm:$0xff]  }
  0x15   :  { %1830 = vmatpush3.bf16.msra.mxu1 %v2128_v19  ;;  %v2181_v58 = vld [vmem:[%s2853_s1 + $0x180] sm:$0xff]   ;;  %v2185_v61 = vld [vmem:[%s2853_s1 + $0x168] sm:$0xff]   ;;  %v2191_v0 = vld [vmem:[%s2853_s1 + $0x190] sm:$0xff]  }
  0x16   :  { %1831 = vmatprep.subr.bf16.mxu1 %v2131_v22  ;;  %v2186_v62 = vld [vmem:[%s2853_s1 + $0x188] sm:$0xff]   ;;  %v2175_v1 = vld [vmem:[%s2854_s0 + $0xe0] ss:$28 sps:$4 sm:$0xff]   ;;  %v2195_v4 = vld [vmem:[%s2853_s1 + $0x170] sm:$0xff]  }
  0x17   :  { %1768 = vmatpush3.bf16.msra.mxu0 %v2130_v21  ;;  %v2189_v63 = vld [vmem:[%s2853_s1 + $0x128] sm:$0xff]   ;;  %v2182_v3 = vld [vmem:[%s2854_s0 + $0x11c] ss:$28 sps:$4 sm:$0xff]   ;;  %v2187_v6 = vld [vmem:[%s2854_s0 + $0x124] ss:$28 sps:$4 sm:$0xff]  }
  0x18   :  { %1769 = vmatprep.subr.bf16.mxu0 %v2133_v24  ;;  %v2180_v2 = vld [vmem:[%s2854_s0 + $0xe8] ss:$28 sps:$4 sm:$0xff]   ;;  %v2196_v5 = vld [vmem:[%s2853_s1 + $0x198] sm:$0xff]   ;;  %v2199_v7 = vld [vmem:[%s2853_s1 + $0x130] sm:$0xff]  }
  0x19   :  { %1832 = vmatpush3.bf16.msra.mxu1 %v2132_v23  ;;  %v2201_v8 = vld [vmem:[%s2853_s1 + $0x1a0] sm:$0xff]   ;;  %v2184_v9 = vld [vmem:[%s2854_s0 + $0x118] ss:$28 sps:$4 sm:$0xff]   ;;  %v2206_v13 = vld [vmem:[%s2853_s1 + $0x1a8] sm:$0xff]  }
  0x1a   :  { %1833 = vmatprep.subr.bf16.mxu1 %v2135_v26  ;;  %v2205_v10 = vld [vmem:[%s2853_s1 + $0x178] sm:$0xff]   ;;  %v2192_v12 = vld [vmem:[%s2854_s0 + $0x154] ss:$28 sps:$4 sm:$0xff]   ;;  %v2202_v18 = vld [vmem:[%s2854_s0 + $0x18c] ss:$28 sps:$4 sm:$0xff]  }
  0x1b   :  { %1770 = vmatpush3.bf16.msra.mxu0 %v2134_v25  ;;  %v2190_v11 = vld [vmem:[%s2854_s0 + $0x120] ss:$28 sps:$4 sm:$0xff]   ;;  %v2211_v16 = vld [vmem:[%s2853_s1 + $0x1b0] sm:$0xff]   ;;  %v2204_v22 = vld [vmem:[%s2854_s0 + $0x188] ss:$28 sps:$4 sm:$0xff]  }
  0x1c   :  { %1771 = vmatprep.subr.bf16.mxu0 %v2137_v28  ;;  %v2209_v14 = vld [vmem:[%s2853_s1 + $0x138] sm:$0xff]   ;;  %v2194_v17 = vld [vmem:[%s2854_s0 + $0x150] ss:$28 sps:$4 sm:$0xff]  }
  0x1d   :  { %1834 = vmatpush3.bf16.msra.mxu1 %v2136_v27  ;;  %v2197_v15 = vld [vmem:[%s2854_s0 + $0x15c] ss:$28 sps:$4 sm:$0xff]   ;;  %v2207_v21 = vld [vmem:[%s2854_s0 + $0x194] ss:$28 sps:$4 sm:$0xff]   ;;  %v2218_v27 = vld [vmem:[%s2854_s0 + $0x4c] ss:$28 sps:$4 sm:$0xff]  }
  0x1e   :  { %1835 = vmatprep.subr.bf16.mxu1 %v2139_v30  ;;  %v2215_v19 = vld [vmem:[%s2853_s1 + $0x1b8] sm:$0xff]   ;;  %v2214_v23 = vld [vmem:[%s2854_s0 + $0x14] ss:$28 sps:$4 sm:$0xff]   ;;  %v2220_v30 = vld [vmem:[%s2854_s0 + $0x48] ss:$28 sps:$4 sm:$0xff]  }
  0x1f   :  { %1772 = vmatpush3.bf16.msra.mxu0 %v2138_v29  ;;  %v2200_v20 = vld [vmem:[%s2854_s0 + $0x158] ss:$28 sps:$4 sm:$0xff]   ;;  %v2210_v24 = vld [vmem:[%s2854_s0 + $0x190] ss:$28 sps:$4 sm:$0xff]   ;;  %v2224_v29 = vld [vmem:[%s2854_s0 + $0x88] ss:$28 sps:$4 sm:$0xff]  }
  0x20   :  { %1885 = vmatprep.subr.bf16.mxu0 %v2144_v34  ;;  %v2216_v25 = vld [vmem:[%s2854_s0 + $0x18] ss:$28 sps:$4 sm:$0xff]   ;;  %v2212_v26 = vld [vmem:[%s2854_s0 + $0x10] ss:$28 sps:$4 sm:$0xff]   ;;  %v2225_v32 = vld [vmem:[%s2854_s0 + $0xc0] ss:$28 sps:$4 sm:$0xff]  }
  0x21   :  { %1836 = vmatpush3.bf16.msra.mxu1 %v2143_v33  ;;  %v2217_v28 = vld [vmem:[%s2854_s0 + $0x50] ss:$28 sps:$4 sm:$0xff]   ;;  %v2232_v33 = vld [vmem:[%s2854_s0 + $0xf8] ss:$28 sps:$4 sm:$0xff]   ;;  %v2223_v34 = vld [vmem:[%s2854_s0 + $0x80] ss:$28 sps:$4 sm:$0xff]  }
  0x22   :  { %867 = vmatmul.mubr.bf16.vlgmr.msra.gmra.mrb[0].mxu0 %v2140_v31  ;;  %1997 = vmatprep.subr.bf16.mxu1 %v2181_v58  ;;  %v2221_v31 = vld [vmem:[%s2854_s0 + $0x84] ss:$28 sps:$4 sm:$0xff]   ;;  %v2233_v36 = vld [vmem:[%s2854_s0 + $0x130] ss:$28 sps:$4 sm:$0xff]  }
  0x23   :  { %1886 = vmatpush3.bf16.msra.mxu0 %v2148_v37  ;;  %874 = vmatprep.mubr.bf16.mxu0 %v2149_v38  ;;  %v2240_v37 = vld [vmem:[%s2854_s0 + $0x168] ss:$28 sps:$4 sm:$0xff]   ;;  %v2228_v38 = vld [vmem:[%s2854_s0 + $0xb8] ss:$28 sps:$4 sm:$0xff]  }
  0x24   :  { %964 = vmatmul.mubr.bf16.vlgmr.msra.gmra.mrb[0].mxu1 %v2145_v35  ;;  %1887 = vmatprep.subr.bf16.mxu0 %v2152_v40  ;;  %v2226_v35 = vld [vmem:[%s2854_s0 + $0xbc] ss:$28 sps:$4 sm:$0xff]  }
  0x25   :  { %971 = vmatprep.mubr.bf16.mxu1 %v2153_v41  ;;  %1998 = vmatpush3.bf16.msra.mxu1 %v2181_v58  ;;  %v2241_v40 = vld [vmem:[%s2854_s0 + $0x1a0] ss:$28 sps:$4 sm:$0xff]   ;;  %v2231_v41 = vld [vmem:[%s2854_s0 + $0xf0] ss:$28 sps:$4 sm:$0xff]  }
  0x26   :  { %1999 = vmatprep.subr.bf16.mxu1 %v2186_v62 }
  0x27   :  { %1888 = vmatpush3.bf16.msra.mxu0 %v2155_v42  ;;  %v2234_v42 = vld [vmem:[%s2854_s0 + $0x12c] ss:$28 sps:$4 sm:$0xff]  }
  0x28   :  { %1889 = vmatprep.subr.bf16.mxu0 %v2160_v45  ;;  %v2239_v45 = vld [vmem:[%s2854_s0 + $0x160] ss:$28 sps:$4 sm:$0xff]  }
  0x29   :  { %2000 = vmatpush3.bf16.msra.mxu1 %v2186_v62 }
  0x2a   :  { %875 = vmatmul.mubr.bf16.gmra.mrb[4].mxu0 %v2151_v39  ;;  %2001 = vmatprep.subr.bf16.mxu1 %v2191_v0  ;;  %v2229_v39 = vld [vmem:[%s2854_s0 + $0xf4] ss:$28 sps:$4 sm:$0xff]  }
  0x2b   :  { %882 = vmatprep.mubr.bf16.mxu0 %v2157_v44  ;;  %1890 = vmatpush3.bf16.msra.mxu0 %v2163_v47  ;;  %v2237_v44 = vld [vmem:[%s2854_s0 + $0x164] ss:$28 sps:$4 sm:$0xff]   ;;  %v2244_v47 = vld [vmem:[%s2854_s0 + $0x198] ss:$28 sps:$4 sm:$0xff]  }
  0x2c   :  { %972 = vmatmul.mubr.bf16.gmra.mrb[4].mxu1 %v2156_v43  ;;  %1891 = vmatprep.subr.bf16.mxu0 %v2168_v50  ;;  %v2236_v43 = vld [vmem:[%s2854_s0 + $0x128] ss:$28 sps:$4 sm:$0xff]   ;;  %v2247_v50 = vld [vmem:[%s2855_s3 + $0x10] sm:$0xff]  }
  0x2d   :  { %979 = vmatprep.mubr.bf16.mxu1 %v2161_v46  ;;  %2002 = vmatpush3.bf16.msra.mxu1 %v2191_v0  ;;  %v2242_v46 = vld [vmem:[%s2854_s0 + $0x19c] ss:$28 sps:$4 sm:$0xff]  }
  0x2e   :  { %2003 = vmatprep.subr.bf16.mxu1 %v2196_v5 }
  0x2f   :  { %1892 = vmatpush3.bf16.msra.mxu0 %v2171_v52  ;;  %v2249_v52 = vld [vmem:[%s2855_s3 + $0x20] sm:$0xff]  }
  0x30   :  { %1893 = vmatprep.subr.bf16.mxu0 %v2176_v54  ;;  %v2251_v54 = vld [vmem:[%s2855_s3 + $0x30] sm:$0xff]  }
  0x31   :  { %2004 = vmatpush3.bf16.msra.mxu1 %v2196_v5 }
  0x32   :  { %883 = vmatmul.mubr.bf16.gmra.mrb[8].mxu0 %v2159_v48  ;;  %2005 = vmatprep.subr.bf16.mxu1 %v2201_v8  ;;  %v2245_v48 = vld [vmem:[%s2855_s3] sm:$0xff]  }
  0x33   :  { %890 = vmatprep.mubr.bf16.mxu0 %v2165_v49  ;;  %1894 = vmatpush3.bf16.msra.mxu0 %v2179_v56  ;;  %v2246_v49 = vld [vmem:[%s2855_s3 + $0x8] sm:$0xff]  }
  0x34   :  { %980 = vmatmul.mubr.bf16.gmra.mrb[8].mxu1 %v2164_v51  ;;  %1895 = vmatprep.subr.bf16.mxu0 %v2185_v61  ;;  %v2248_v51 = vld [vmem:[%s2855_s3 + $0x18] sm:$0xff]  }
  0x35   :  { %987 = vmatprep.mubr.bf16.mxu1 %v2169_v53  ;;  %2006 = vmatpush3.bf16.msra.mxu1 %v2201_v8  ;;  %v2250_v53 = vld [vmem:[%s2855_s3 + $0x28] sm:$0xff]   ;;  %v2673_v8 = vld [vmem:[%s2857_s5] sm:$0xff]  }
  0x36   :  { %2007 = vmatprep.subr.bf16.mxu1 %v2206_v13 }
  0x37   :  { %1896 = vmatpush3.bf16.msra.mxu0 %v2189_v63 }
  0x38   :  { %1897 = vmatprep.subr.bf16.mxu0 %v2195_v4 }
  0x39   :  { %2008 = vmatpush3.bf16.msra.mxu1 %v2206_v13 }
  0x3a   :  { %891 = vmatmul.mubr.bf16.gmra.mrb[12].mxu0 %v2167_v55  ;;  %2009 = vmatprep.subr.bf16.mxu1 %v2211_v16  ;;  %v2252_v55 = vld [vmem:[%s2855_s3 + $0x38] sm:$0xff]  }
  0x3b   :  { %898 = vmatprep.mubr.bf16.mxu0 %v2173_v57  ;;  %1898 = vmatpush3.bf16.msra.mxu0 %v2199_v7  ;;  %v2664_v57 = vld [vmem:[%s2856_s2] ss:$0 sm:$0xff] }
  0x3c   :  { %988 = vmatmul.mubr.bf16.gmra.mrb[12].mxu1 %v2172_v59  ;;  %1899 = vmatprep.subr.bf16.mxu0 %v2205_v10  ;;  %v2678_v10 = vld [vmem:[%s2857_s5 + $0x8] sm:$0xff]  }
  0x3d   :  { %995 = vmatprep.mubr.bf16.mxu1 %v2177_v60  ;;  %2010 = vmatpush3.bf16.msra.mxu1 %v2211_v16 }
  0x3e   :  { %2011 = vmatprep.subr.bf16.mxu1 %v2215_v19 }
  0x3f   :  { %1900 = vmatpush3.bf16.msra.mxu0 %v2209_v14 }
  0x40   :  { %2061 = vmatprep.subr.bf16.mxu0 %v2673_v8 }
  0x41   :  { %2012 = vmatpush3.bf16.msra.mxu1 %v2215_v19 }
  0x42   :  { %899 = vmatmul.mubr.bf16.gmra.mrb[16].mxu0 %v2175_v1  ;;  %2029 = vmatprep.subr.bf16.mxu1 %v2245_v48 }
  0x43   :  { %906 = vmatprep.mubr.bf16.mxu0 %v2182_v3 }
  0x44   :  { %996 = vmatmul.mubr.bf16.gmra.mrb[16].mxu1 %v2180_v2 }
  0x45   :  { %1003 = vmatprep.mubr.bf16.mxu1 %v2187_v6 }
  0x4a   :  { %907 = vmatmul.mubr.bf16.gmra.mrb[20].mxu0 %v2184_v9 }
  0x4b   :  { %914 = vmatprep.mubr.bf16.mxu0 %v2192_v12 }
  0x4c   :  { %1004 = vmatmul.mubr.bf16.gmra.mrb[20].mxu1 %v2190_v11 }
  0x4d   :  { %1011 = vmatprep.mubr.bf16.mxu1 %v2197_v15  ;;  %v2688_v15 = vld [vmem:[%s2857_s5 + $0x10] sm:$0xff]  }
  0x52   :  { %915 = vmatmul.mubr.bf16.gmra.mrb[24].mxu0 %v2194_v17 }
  0x53   :  { %922 = vmatprep.mubr.bf16.mxu0 %v2202_v18 }
  0x54   :  { %1012 = vmatmul.mubr.bf16.gmra.mrb[24].mxu1 %v2200_v20 }
  0x55   :  { %1019 = vmatprep.mubr.bf16.mxu1 %v2207_v21 }
  0x5a   :  { %923 = vmatmul.mubr.bf16.gmra.mrb[28].mxu0 %v2204_v22 }
  0x5b   :  { %1060 = vmatprep.mubr.bf16.mxu0 %v2214_v23 }
  0x5c   :  { %1020 = vmatmul.mubr.bf16.gmra.mrb[28].mxu1 %v2210_v24 }
  0x5d   :  { %2013 = vmatprep.mubr.bf16.mxu1 %v2216_v25 }
  0x62   :  { %1061 = vmatmul.mubr.bf16.vlgmr.msra.gmra.mrb[32].mxu0 %v2212_v26 }
  0x63   :  { %1068 = vmatprep.mubr.bf16.mxu0 %v2218_v27  ;;  %2062 = vmatpush3.bf16.msra.mxu0 %v2673_v8  ;;  %v2700_v27 = vld [vmem:[%s2857_s5 + $0x18] sm:$0xff]  }
  0x64   :  { %2014 = vmatmul.mubr.bf16.vlgmr.msra.gmra.mrb[32].mxu1 %v2217_v28  ;;  %2063 = vmatprep.subr.bf16.mxu0 %v2678_v10 }
  0x65   :  { %2017 = vmatprep.mubr.bf16.mxu1 %v2224_v29  ;;  %2030 = vmatpush3.bf16.msra.mxu1 %v2245_v48 }
  0x66   :  { %2031 = vmatprep.subr.bf16.mxu1 %v2246_v49 }
  0x67   :  { %2064 = vmatpush3.bf16.msra.mxu0 %v2678_v10 }
  0x68   :  { %2065 = vmatprep.subr.bf16.mxu0 %v2688_v15 }
  0x69   :  { %2032 = vmatpush3.bf16.msra.mxu1 %v2246_v49 }
  0x6a   :  { %1069 = vmatmul.mubr.bf16.gmra.mrb[36].mxu0 %v2220_v30  ;;  %2033 = vmatprep.subr.bf16.mxu1 %v2247_v50 }
  0x6b   :  { %1076 = vmatprep.mubr.bf16.mxu0 %v2221_v31  ;;  %2066 = vmatpush3.bf16.msra.mxu0 %v2688_v15 }
  0x6c   :  { %2018 = vmatmul.mubr.bf16.gmra.mrb[36].mxu1 %v2225_v32  ;;  %2067 = vmatprep.subr.bf16.mxu0 %v2700_v27 }
  0x6d   :  { %2021 = vmatprep.mubr.bf16.mxu1 %v2232_v33  ;;  %2034 = vmatpush3.bf16.msra.mxu1 %v2247_v50 }
  0x6e   :  { %2035 = vmatprep.subr.bf16.mxu1 %v2248_v51 }
  0x6f   :  { %2068 = vmatpush3.bf16.msra.mxu0 %v2700_v27 }
  0x71   :  { %2036 = vmatpush3.bf16.msra.mxu1 %v2248_v51 }
  0x72   :  { %1077 = vmatmul.mubr.bf16.gmra.mrb[40].mxu0 %v2223_v34  ;;  %2037 = vmatprep.subr.bf16.mxu1 %v2249_v52 }
  0x73   :  { %1084 = vmatprep.mubr.bf16.mxu0 %v2226_v35  ;;  %v2709_v35 = vld [vmem:[%s2857_s5 + $0x20] sm:$0xff]  }
  0x74   :  { %2022 = vmatmul.mubr.bf16.gmra.mrb[40].mxu1 %v2233_v36  ;;  %2069 = vmatprep.subr.bf16.mxu0 %v2709_v35 }
  0x75   :  { %2025 = vmatprep.mubr.bf16.mxu1 %v2240_v37  ;;  %2038 = vmatpush3.bf16.msra.mxu1 %v2249_v52 }
  0x76   :  { %2039 = vmatprep.subr.bf16.mxu1 %v2250_v53  ;;  %2070 = vmatpush3.bf16.msra.mxu0 %v2709_v35 }
  0x79   :  { %2040 = vmatpush3.bf16.msra.mxu1 %v2250_v53 }
  0x7a   :  { %1085 = vmatmul.mubr.bf16.gmra.mrb[44].mxu0 %v2228_v38  ;;  %2041 = vmatprep.subr.bf16.mxu1 %v2251_v54 }
  0x7b   :  { %1092 = vmatprep.mubr.bf16.mxu0 %v2229_v39 }
  0x7c   :  { %2026 = vmatmul.mubr.bf16.gmra.mrb[44].mxu1 %v2241_v40 }
  0x7d   :  { %2042 = vmatpush3.bf16.msra.mxu1 %v2251_v54 }
  0x7e   :  { %2043 = vmatprep.subr.bf16.mxu1 %v2252_v55 }
  0x81   :  { %2044 = vmatpush3.bf16.msra.mxu1 %v2252_v55 }
  0x82   :  { %1093 = vmatmul.mubr.bf16.gmra.mrb[48].mxu0 %v2231_v41  ;;  %2093 = vmatprep.subr.bf16.mxu1 %v2673_v8 }
  0x83   :  { %1100 = vmatprep.mubr.bf16.mxu0 %v2234_v42 }
  0x8a   :  { %1101 = vmatmul.mubr.bf16.gmra.mrb[52].mxu0 %v2236_v43 }
  0x8b   :  { %1108 = vmatprep.mubr.bf16.mxu0 %v2237_v44 }
  0x92   :  { %1109 = vmatmul.mubr.bf16.gmra.mrb[56].mxu0 %v2239_v45  ;;  %v2720_v45 = vld [vmem:[%s2857_s5 + $0x28] sm:$0xff]  }
  0x93   :  { %1116 = vmatprep.mubr.bf16.mxu0 %v2242_v46  ;;  %2071 = vmatprep.subr.bf16.mxu0 %v2720_v45 }
  0x94   :  { %2072 = vmatpush3.bf16.msra.mxu0 %v2720_v45 }
  0x9a   :  { %1117 = vmatmul.mubr.bf16.gmra.mrb[60].mxu0 %v2244_v47 }
  0xf5   :  { %v1773_v56 = vpop.f32.mrb[0].mxu0 }
  0xf6   :  { %v1774_v58 = vpop.f32.mrb[1].mxu0 }
  0xf7   :  { %v1775_v59 = vadd.f32 %v1774_v58, %v1773_v56  ;;  %v1776_v60 = vpop.f32.mrb[2].mxu0  ;;  %v1837_v61 = vpop.f32.mrb[0].mxu1 }
  0xf8   :  { %v1777_v62 = vpop.f32.mrb[3].mxu0  ;;  %v1838_v1 = vpop.f32.mrb[1].mxu1 }
  0xf9   :  { %v869_v63 = vadd.f32 %v1775_v59, %v2664_v57  ;;  %v1778_v0 = vadd.f32 %v1777_v62, %v1776_v60  ;;  %v1839_v2 = vadd.f32 %v1838_v1, %v1837_v61  ;;  %v1840_v3 = vpop.f32.mrb[2].mxu1 }
  0xfa   :  { %v1841_v5 = vpop.f32.mrb[3].mxu1 }
  0xfb   :  { %v872_v4 = vadd.f32 %v1778_v0, %v2664_v57  ;;  %v2668_v6 = vadd.f32 %v1839_v2, %v869_v63  ;;  %v1842_v7 = vadd.f32 %v1841_v5, %v1840_v3 }
  0xfd   :  { %v1779_v9 = vpop.f32.mrb[4].mxu0  ;;  %v2680_v11 = vadd.f32 %v1842_v7, %v872_v4 }
  0xfe   :  { %v1780_v12 = vpop.f32.mrb[5].mxu0 }
  0xff   :  { %v1781_v13 = vadd.f32 %v1780_v12, %v1779_v9  ;;  %v1782_v14 = vpop.f32.mrb[6].mxu0  ;;  %v1843_v16 = vpop.f32.mrb[4].mxu1 }
 0x100   :  { %v1783_v17 = vpop.f32.mrb[7].mxu0  ;;  %v1844_v20 = vpop.f32.mrb[5].mxu1 }
 0x101   :  { %v877_v18 = vadd.f32 %v1781_v13, %v2664_v57  ;;  %v1784_v19 = vadd.f32 %v1783_v17, %v1782_v14  ;;  %v1845_v21 = vadd.f32 %v1844_v20, %v1843_v16  ;;  %v1846_v22 = vpop.f32.mrb[6].mxu1 }
 0x102   :  { %v1847_v24 = vpop.f32.mrb[7].mxu1 }
 0x103   :  { %v880_v23 = vadd.f32 %v1784_v19, %v2664_v57  ;;  %v2694_v25 = vadd.f32 %v1845_v21, %v877_v18  ;;  %v1848_v26 = vadd.f32 %v1847_v24, %v1846_v22 }
 0x105   :  { %v1785_v28 = vpop.f32.mrb[8].mxu0  ;;  %v2702_v29 = vadd.f32 %v1848_v26, %v880_v23 }
 0x106   :  { %v1786_v30 = vpop.f32.mrb[9].mxu0 }
 0x107   :  { %v1787_v31 = vadd.f32 %v1786_v30, %v1785_v28  ;;  %v1788_v32 = vpop.f32.mrb[10].mxu0  ;;  %v1849_v33 = vpop.f32.mrb[8].mxu1 }
 0x108   :  { %v1789_v34 = vpop.f32.mrb[11].mxu0  ;;  %v1850_v38 = vpop.f32.mrb[9].mxu1 }
 0x109   :  { %v885_v36 = vadd.f32 %v1787_v31, %v2664_v57  ;;  %v1790_v37 = vadd.f32 %v1789_v34, %v1788_v32  ;;  %v1851_v39 = vadd.f32 %v1850_v38, %v1849_v33  ;;  %v1852_v40 = vpop.f32.mrb[10].mxu1 }
 0x10a   :  { %v1853_v42 = vpop.f32.mrb[11].mxu1 }
 0x10b   :  { %v888_v41 = vadd.f32 %v1790_v37, %v2664_v57  ;;  %v2714_v43 = vadd.f32 %v1851_v39, %v885_v36  ;;  %v1854_v44 = vadd.f32 %v1853_v42, %v1852_v40 }
 0x10d   :  { %v1791_v46 = vpop.f32.mrb[12].mxu0  ;;  %v2722_v47 = vadd.f32 %v1854_v44, %v888_v41 }
 0x10e   :  { %v1792_v48 = vpop.f32.mrb[13].mxu0 }
 0x10f   :  { %v1793_v49 = vadd.f32 %v1792_v48, %v1791_v46  ;;  %v1794_v50 = vpop.f32.mrb[14].mxu0  ;;  %v1855_v51 = vpop.f32.mrb[12].mxu1 }
 0x110   :  { %v1795_v52 = vpop.f32.mrb[15].mxu0  ;;  %v1856_v55 = vpop.f32.mrb[13].mxu1 }
 0x111   :  { %v893_v53 = vadd.f32 %v1793_v49, %v2664_v57  ;;  %v1796_v54 = vadd.f32 %v1795_v52, %v1794_v50  ;;  %v1857_v56 = vadd.f32 %v1856_v55, %v1855_v51  ;;  %v1858_v58 = vpop.f32.mrb[14].mxu1 }
 0x112   :  { %v1859_v60 = vpop.f32.mrb[15].mxu1 }
 0x113   :  { %v896_v59 = vadd.f32 %v1796_v54, %v2664_v57  ;;  %v2729_v61 = vadd.f32 %v1857_v56, %v893_v53  ;;  %v1860_v62 = vadd.f32 %v1859_v60, %v1858_v58 }
 0x115   :  { %v1797_v63 = vpop.f32.mrb[16].mxu0  ;;  %v2731_v0 = vadd.f32 %v1860_v62, %v896_v59 }
 0x116   :  { %v1798_v1 = vpop.f32.mrb[17].mxu0 }
 0x117   :  { %v1799_v2 = vadd.f32 %v1798_v1, %v1797_v63  ;;  %v1800_v3 = vpop.f32.mrb[18].mxu0  ;;  %v1861_v4 = vpop.f32.mrb[16].mxu1 }
 0x118   :  { %v1801_v5 = vpop.f32.mrb[19].mxu0  ;;  %v1862_v12 = vpop.f32.mrb[17].mxu1 }
 0x119   :  { %v901_v7 = vadd.f32 %v1799_v2, %v2664_v57  ;;  %v1802_v9 = vadd.f32 %v1801_v5, %v1800_v3  ;;  %v1863_v13 = vadd.f32 %v1862_v12, %v1861_v4  ;;  %v1864_v14 = vpop.f32.mrb[18].mxu1 }
 0x11a   :  { %v1865_v17 = vpop.f32.mrb[19].mxu1 }
 0x11b   :  { %v904_v16 = vadd.f32 %v1802_v9, %v2664_v57  ;;  %v2735_v18 = vadd.f32 %v1863_v13, %v901_v7  ;;  %v1866_v19 = vadd.f32 %v1865_v17, %v1864_v14 }
 0x11d   :  { %v1803_v20 = vpop.f32.mrb[20].mxu0  ;;  %v2737_v21 = vadd.f32 %v1866_v19, %v904_v16 }
 0x11e   :  { %v1804_v22 = vpop.f32.mrb[21].mxu0 }
 0x11f   :  { %v1805_v23 = vadd.f32 %v1804_v22, %v1803_v20  ;;  %v1806_v24 = vpop.f32.mrb[22].mxu0  ;;  %v1867_v26 = vpop.f32.mrb[20].mxu1 }
 0x120   :  { %v1807_v28 = vpop.f32.mrb[23].mxu0  ;;  %v1868_v32 = vpop.f32.mrb[21].mxu1 }
 0x121   :  { %v909_v30 = vadd.f32 %v1805_v23, %v2664_v57  ;;  %v1808_v31 = vadd.f32 %v1807_v28, %v1806_v24  ;;  %v1869_v33 = vadd.f32 %v1868_v32, %v1867_v26  ;;  %v1870_v34 = vpop.f32.mrb[22].mxu1 }
 0x122   :  { %v1871_v37 = vpop.f32.mrb[23].mxu1 }
 0x123   :  { %v912_v36 = vadd.f32 %v1808_v31, %v2664_v57  ;;  %v2741_v38 = vadd.f32 %v1869_v33, %v909_v30  ;;  %v1872_v39 = vadd.f32 %v1871_v37, %v1870_v34 }
 0x125   :  { %v1809_v40 = vpop.f32.mrb[24].mxu0  ;;  %v2743_v41 = vadd.f32 %v1872_v39, %v912_v36 }
 0x126   :  { %v1810_v42 = vpop.f32.mrb[25].mxu0 }
 0x127   :  { %v1811_v44 = vadd.f32 %v1810_v42, %v1809_v40  ;;  %v1812_v46 = vpop.f32.mrb[26].mxu0  ;;  %v1873_v48 = vpop.f32.mrb[24].mxu1 }
 0x128   :  { %v1813_v49 = vpop.f32.mrb[27].mxu0  ;;  %v1874_v52 = vpop.f32.mrb[25].mxu1 }
 0x129   :  { %v917_v50 = vadd.f32 %v1811_v44, %v2664_v57  ;;  %v1814_v51 = vadd.f32 %v1813_v49, %v1812_v46  ;;  %v1875_v53 = vadd.f32 %v1874_v52, %v1873_v48  ;;  %v1876_v54 = vpop.f32.mrb[26].mxu1 }
 0x12a   :  { %v1877_v56 = vpop.f32.mrb[27].mxu1 }
 0x12b   :  { %v920_v55 = vadd.f32 %v1814_v51, %v2664_v57  ;;  %v2747_v58 = vadd.f32 %v1875_v53, %v917_v50  ;;  %v1878_v59 = vadd.f32 %v1877_v56, %v1876_v54 }
 0x12d   :  { %v1815_v60 = vpop.f32.mrb[28].mxu0  ;;  %v2749_v62 = vadd.f32 %v1878_v59, %v920_v55 }
 0x12e   :  { %v1816_v63 = vpop.f32.mrb[29].mxu0 }
 0x12f   :  { %v1817_v1 = vadd.f32 %v1816_v63, %v1815_v60  ;;  %v1818_v2 = vpop.f32.mrb[30].mxu0  ;;  %v1879_v3 = vpop.f32.mrb[28].mxu1 }
 0x130   :  { %v1819_v4 = vpop.f32.mrb[31].mxu0  ;;  %v1880_v9 = vpop.f32.mrb[29].mxu1 }
 0x131   :  { %v925_v5 = vadd.f32 %v1817_v1, %v2664_v57  ;;  %v1820_v7 = vadd.f32 %v1819_v4, %v1818_v2  ;;  %v1881_v12 = vadd.f32 %v1880_v9, %v1879_v3  ;;  %v1882_v13 = vpop.f32.mrb[30].mxu1 }
 0x132   :  { %v1883_v16 = vpop.f32.mrb[31].mxu1 }
 0x133   :  { %v928_v14 = vadd.f32 %v1820_v7, %v2664_v57  ;;  %v2753_v17 = vadd.f32 %v1881_v12, %v925_v5  ;;  %v1884_v19 = vadd.f32 %v1883_v16, %v1882_v13 }
 0x135   :  { %v1901_v20 = vpop.f32.mrb[32].mxu0  ;;  %v2755_v22 = vadd.f32 %v1884_v19, %v928_v14 }
 0x136   :  { %v1902_v23 = vpop.f32.mrb[33].mxu0 }
 0x137   :  { %v1903_v24 = vadd.f32 %v1902_v23, %v1901_v20  ;;  %v1904_v26 = vpop.f32.mrb[34].mxu0  ;;  %v2015_v30 = vpop.f32.mrb[32].mxu1 }
 0x138   :  { %v1905_v28 = vpop.f32.mrb[35].mxu0  ;;  %v1159_v33 = vpop.f32.mrb[33].mxu1 }
 0x139   :  { %v1906_v31 = vadd.f32 %v1905_v28, %v1904_v26  ;;  %v1063_v32 = vadd.f32 %v1903_v24, %v2668_v6  ;;  %v2016_v34 = vpop.f32.mrb[34].mxu1 }
 0x13a   :  { %v1162_v37 = vpop.f32.mrb[35].mxu1 }
 0x13b   :  { %v1160_v36 = vadd.f32 %v1159_v33, %v1063_v32  ;;  %v1066_v57 = vadd.f32 %v1906_v31, %v2680_v11 }
 0x13d   :  { %v1163_v39 = vadd.f32 %v1162_v37, %v1066_v57  ;;  %v1907_v40 = vpop.f32.mrb[36].mxu0  ;;  %v1222_v44 = vmax.f32 %v1160_v36, 0.0 }
 0x13e   :  { %v1908_v42 = vpop.f32.mrb[37].mxu0 }
 0x13f   :  { %v1223_v46 = vmax.f32 %v1163_v39, 0.0  ;;  %v1909_v48 = vadd.f32 %v1908_v42, %v1907_v40  ;;  %v1910_v49 = vpop.f32.mrb[38].mxu0  ;;  %v2019_v51 = vpop.f32.mrb[36].mxu1 }
 0x140   :  { %v1911_v50 = vpop.f32.mrb[39].mxu0  ;;  %v1175_v6 = vpop.f32.mrb[37].mxu1 }
 0x141   :  { %v1238_v52 = vpack.c.bf16 %v1223_v46, %v1222_v44  ;;  %v1071_v53 = vadd.f32 %v1909_v48, %v2694_v25  ;;  %v1912_v54 = vadd.f32 %v1911_v50, %v1910_v49  ;;  %v2020_v55 = vpop.f32.mrb[38].mxu1 }
 0x142   :  { %v1178_v11 = vpop.f32.mrb[39].mxu1 }
 0x143   :  { %v1168_v56 = vadd.f32 %v2015_v30, %v1071_v53  ;;  %v1074_v59 = vadd.f32 %v1912_v54, %v2702_v29  ;;  %2045 = vmatprep.mubr.bf16.mxu1 %v1238_v52 }
 0x145   :  { %v1171_v60 = vadd.f32 %v2016_v34, %v1074_v59  ;;  %v1913_v63 = vpop.f32.mrb[40].mxu0  ;;  %v1224_v2 = vmax.f32 %v1168_v56, 0.0 }
 0x146   :  { %v1914_v1 = vpop.f32.mrb[41].mxu0 }
 0x147   :  { %v1225_v3 = vmax.f32 %v1171_v60, 0.0  ;;  %v1915_v4 = vadd.f32 %v1914_v1, %v1913_v63  ;;  %v1916_v5 = vpop.f32.mrb[42].mxu0  ;;  %v2761_v9 = vpop.f32.mrb[40].mxu1 }
 0x148   :  { %v1917_v7 = vpop.f32.mrb[43].mxu0  ;;  %v1191_v14 = vpop.f32.mrb[41].mxu1 }
 0x149   :  { %v1239_v12 = vpack.c.bf16 %v1225_v3, %v1224_v2  ;;  %v1918_v25 = vadd.f32 %v1917_v7, %v1916_v5  ;;  %v1079_v13 = vadd.f32 %v1915_v4, %v2714_v43  ;;  %v2024_v16 = vpop.f32.mrb[42].mxu1 }
 0x14a   :  { %v1194_v20 = vpop.f32.mrb[43].mxu1 }
 0x14b   :  { %v1176_v19 = vadd.f32 %v1175_v6, %v1079_v13  ;;  %2046 = vmatmul.mubr.bf16.vlgmr.msra.gmra.mrb[48].mxu1 %v1239_v12  ;;  %v1082_v29 = vadd.f32 %v1918_v25, %v2722_v47 }
 0x14c   :  { %2101 = vmatpush3.bf16.msra.mxu1 %v2673_v8 }
 0x14d   :  { %v1179_v23 = vadd.f32 %v1178_v11, %v1082_v29  ;;  %v1919_v24 = vpop.f32.mrb[44].mxu0  ;;  %2094 = vmatprep.subr.bf16.mxu1 %v2678_v10  ;;  %v1226_v28 = vmax.f32 %v1176_v19, 0.0 }
 0x14e   :  { %v1920_v26 = vpop.f32.mrb[45].mxu0 }
 0x14f   :  { %v1227_v30 = vmax.f32 %v1179_v23, 0.0  ;;  %v1921_v31 = vadd.f32 %v1920_v26, %v1919_v24  ;;  %v1922_v32 = vpop.f32.mrb[46].mxu0  ;;  %v2767_v43 = vpop.f32.mrb[44].mxu1 }
 0x150   :  { %v1923_v33 = vpop.f32.mrb[47].mxu0  ;;  %2102 = vmatpush3.bf16.msra.mxu1 %v2678_v10  ;;  %v1207_v57 = vpop.f32.mrb[45].mxu1 }
 0x151   :  { %v1240_v34 = vpack.c.bf16 %v1227_v30, %v1226_v28  ;;  %v1087_v47 = vadd.f32 %v1921_v31, %v2729_v61  ;;  %v1924_v36 = vadd.f32 %v1923_v33, %v1922_v32  ;;  %2095 = vmatprep.subr.bf16.mxu1 %v2688_v15  ;;  %v2772_v8 = vpop.f32.mrb[46].mxu1 }
 0x152   :  { %v1210_v40 = vpop.f32.mrb[47].mxu1 }
 0x153   :  { %v1184_v37 = vadd.f32 %v2019_v51, %v1087_v47  ;;  %v1090_v39 = vadd.f32 %v1924_v36, %v2731_v0  ;;  %2049 = vmatprep.mubr.bf16.mxu1 %v1240_v34 }
 0x154   :  { %2103 = vmatpush3.bf16.msra.mxu1 %v2688_v15 }
 0x155   :  { %v1187_v42 = vadd.f32 %v2020_v55, %v1090_v39  ;;  %v1925_v44 = vpop.f32.mrb[48].mxu0  ;;  %2096 = vmatprep.subr.bf16.mxu1 %v2700_v27  ;;  %v1228_v46 = vmax.f32 %v1184_v37, 0.0 }
 0x156   :  { %v1926_v10 = vpop.f32.mrb[49].mxu0 }
 0x157   :  { %v1229_v61 = vmax.f32 %v1187_v42, 0.0  ;;  %v1927_v48 = vadd.f32 %v1926_v10, %v1925_v44  ;;  %v1928_v49 = vpop.f32.mrb[50].mxu0 }
 0x158   :  { %v1929_v50 = vpop.f32.mrb[51].mxu0  ;;  %2104 = vmatpush3.bf16.msra.mxu1 %v2700_v27 }
 0x159   :  { %v1930_v52 = vadd.f32 %v1929_v50, %v1928_v49  ;;  %v1095_v51 = vadd.f32 %v1927_v48, %v2735_v18  ;;  %v1241_v0 = vpack.c.bf16 %v1229_v61, %v1228_v46  ;;  %2097 = vmatprep.subr.bf16.mxu1 %v2709_v35 }
 0x15b   :  { %v1192_v53 = vadd.f32 %v1191_v14, %v1095_v51  ;;  %2050 = vmatmul.mubr.bf16.gmra.mrb[52].mxu1 %v1241_v0  ;;  %v1098_v15 = vadd.f32 %v1930_v52, %v2737_v21 }
 0x15c   :  { %2105 = vmatpush3.bf16.msra.mxu1 %v2709_v35 }
 0x15d   :  { %v1195_v54 = vadd.f32 %v1194_v20, %v1098_v15  ;;  %v1931_v6 = vpop.f32.mrb[52].mxu0  ;;  %2098 = vmatprep.subr.bf16.mxu1 %v2720_v45  ;;  %v1230_v56 = vmax.f32 %v1192_v53, 0.0 }
 0x15e   :  { %v1932_v55 = vpop.f32.mrb[53].mxu0 }
 0x15f   :  { %v1231_v59 = vmax.f32 %v1195_v54, 0.0  ;;  %v1933_v27 = vadd.f32 %v1932_v55, %v1931_v6  ;;  %v1934_v11 = vpop.f32.mrb[54].mxu0 }
 0x160   :  { %v1935_v60 = vpop.f32.mrb[55].mxu0  ;;  %2106 = vmatpush3.bf16.msra.mxu1 %v2720_v45 }
 0x161   :  { %v1242_v18 = vpack.c.bf16 %v1231_v59, %v1230_v56  ;;  %v1103_v63 = vadd.f32 %v1933_v27, %v2741_v38  ;;  %v1936_v1 = vadd.f32 %v1935_v60, %v1934_v11 }
 0x163   :  { %v1200_v21 = vadd.f32 %v2761_v9, %v1103_v63  ;;  %v1106_v35 = vadd.f32 %v1936_v1, %v2743_v41  ;;  %2053 = vmatprep.mubr.bf16.mxu1 %v1242_v18 }
 0x165   :  { %v1203_v2 = vadd.f32 %v2024_v16, %v1106_v35  ;;  %v1937_v3 = vpop.f32.mrb[56].mxu0  ;;  %v1232_v5 = vmax.f32 %v1200_v21, 0.0 }
 0x166   :  { %v1938_v4 = vpop.f32.mrb[57].mxu0 }
 0x167   :  { %v1233_v7 = vmax.f32 %v1203_v2, 0.0  ;;  %v1939_v12 = vadd.f32 %v1938_v4, %v1937_v3  ;;  %v1940_v25 = vpop.f32.mrb[58].mxu0 }
 0x168   :  { %v1941_v13 = vpop.f32.mrb[59].mxu0 }
 0x169   :  { %v1942_v14 = vadd.f32 %v1941_v13, %v1940_v25  ;;  %v1111_v45 = vadd.f32 %v1939_v12, %v2747_v58  ;;  %v1243_v19 = vpack.c.bf16 %v1233_v7, %v1232_v5 }
 0x16b   :  { %v1208_v29 = vadd.f32 %v1207_v57, %v1111_v45  ;;  %2054 = vmatmul.mubr.bf16.gmra.mrb[56].mxu1 %v1243_v19  ;;  %v1114_v38 = vadd.f32 %v1942_v14, %v2749_v62  ;;  %v2259_v57 = vld [vmem:[%s2857_s5 + $0x30] sm:$0xff]  }
 0x16c   :  { %2073 = vmatprep.subr.bf16.mxu0 %v2259_v57  ;;  %2099 = vmatprep.subr.bf16.mxu1 %v2259_v57 }
 0x16d   :  { %v1211_v9 = vadd.f32 %v1210_v40, %v1114_v38  ;;  %v1943_v20 = vpop.f32.mrb[60].mxu0  ;;  %v1234_v23 = vmax.f32 %v1208_v29, 0.0  ;;  %2074 = vmatpush3.bf16.msra.mxu0 %v2259_v57  ;;  %2107 = vmatpush3.bf16.msra.mxu1 %v2259_v57 }
 0x16e   :  { %v1944_v41 = vpop.f32.mrb[61].mxu0 }
 0x16f   :  { %v1235_v16 = vmax.f32 %v1211_v9, 0.0  ;;  %v1945_v24 = vadd.f32 %v1944_v41, %v1943_v20  ;;  %v1946_v26 = vpop.f32.mrb[62].mxu0 }
 0x170   :  { %v1947_v28 = vpop.f32.mrb[63].mxu0 }
 0x171   :  { %v1244_v30 = vpack.c.bf16 %v1235_v16, %v1234_v23  ;;  %v1119_v31 = vadd.f32 %v1945_v24, %v2753_v17  ;;  %v1948_v32 = vadd.f32 %v1947_v28, %v1946_v26  ;;  %v2260_v17 = vld [vmem:[%s2857_s5 + $0x38] sm:$0xff]  }
 0x172   :  { %2075 = vmatprep.subr.bf16.mxu0 %v2260_v17  ;;  %2100 = vmatprep.subr.bf16.mxu1 %v2260_v17 }
 0x173   :  { %v1216_v33 = vadd.f32 %v2767_v43, %v1119_v31  ;;  %v1122_v58 = vadd.f32 %v1948_v32, %v2755_v22  ;;  %2057 = vmatprep.mubr.bf16.mxu1 %v1244_v30  ;;  %2076 = vmatpush3.bf16.msra.mxu0 %v2260_v17  ;;  %v1739_v22 = vld [vmem:[%s2858_s4] ss:$0 sm:$0xff] }
 0x174   :  { %2108 = vmatpush3.bf16.msra.mxu1 %v2260_v17 }
 0x175   :  { %v1219_v34 = vadd.f32 %v2772_v8, %v1122_v58  ;;  %v1236_v62 = vmax.f32 %v1216_v33, 0.0  ;;  %v1748_v58 = vld [vmem:[%s2859_s6] ss:$0 sm:$0xff] }
 0x177   :  { %v1237_v47 = vmax.f32 %v1219_v34, 0.0 }
 0x179   :  { %v1245_v36 = vpack.c.bf16 %v1237_v47, %v1236_v62 }
 0x17b   :  { %2058 = vmatmul.mubr.bf16.gmra.mrb[60].mxu1 %v1245_v36 }
 0x21e   :  { %v2047_v43 = vpop.f32.mrb[48].mxu1 }
 0x21f   :  { %v1360_v8 = vadd.f32 %v2047_v43, %v1739_v22  ;;  %v1351_v37 = vpop.f32.mrb[49].mxu1 }
 0x220   :  { %v1352_v39 = vadd.f32 %v1739_v22, %v1351_v37  ;;  %v2048_v40 = vpop.f32.mrb[50].mxu1 }
 0x221   :  { %v1363_v42 = vadd.f32 %v2048_v40, %v1739_v22  ;;  %v1354_v44 = vpop.f32.mrb[51].mxu1  ;;  %v1416_v46 = vmax.f32 %v1360_v8, 0.0 }
 0x222   :  { %v1355_v10 = vadd.f32 %v1739_v22, %v1354_v44  ;;  %v1414_v48 = vmax.f32 %v1352_v39, 0.0 }
 0x223   :  { %v1417_v61 = vmax.f32 %v1363_v42, 0.0 }
 0x224   :  { %v1415_v49 = vmax.f32 %v1355_v10, 0.0 }
 0x225   :  { %v1431_v50 = vpack.c.bf16 %v1417_v61, %v1416_v46 }
 0x226   :  { %v1430_v52 = vpack.c.bf16 %v1415_v49, %v1414_v48 }
 0x228   :  { %2077 = vmatprep.mubr.bf16.mxu0 %v1430_v52 }
 0x229   :  { %2078 = vmatmul.mubr.bf16.vlgmr.msra.gmra.mrb[64].mxu0 %v1431_v50 }
 0x22e   :  { %v2051_v51 = vpop.f32.mrb[52].mxu1 }
 0x22f   :  { %v1376_v0 = vadd.f32 %v2051_v51, %v1739_v22  ;;  %v1367_v53 = vpop.f32.mrb[53].mxu1 }
 0x230   :  { %v1368_v15 = vadd.f32 %v1739_v22, %v1367_v53  ;;  %v2052_v54 = vpop.f32.mrb[54].mxu1 }
 0x231   :  { %v1379_v6 = vadd.f32 %v2052_v54, %v1739_v22  ;;  %v1370_v55 = vpop.f32.mrb[55].mxu1  ;;  %v1420_v59 = vmax.f32 %v1376_v0, 0.0 }
 0x232   :  { %v1371_v56 = vadd.f32 %v1739_v22, %v1370_v55  ;;  %v1418_v11 = vmax.f32 %v1368_v15, 0.0 }
 0x233   :  { %v1421_v27 = vmax.f32 %v1379_v6, 0.0 }
 0x234   :  { %v1419_v60 = vmax.f32 %v1371_v56, 0.0 }
 0x235   :  { %v1433_v18 = vpack.c.bf16 %v1421_v27, %v1420_v59 }
 0x236   :  { %v1432_v63 = vpack.c.bf16 %v1419_v60, %v1418_v11 }
 0x238   :  { %2081 = vmatprep.mubr.bf16.mxu0 %v1432_v63 }
 0x239   :  { %2082 = vmatmul.mubr.bf16.gmra.mrb[68].mxu0 %v1433_v18 }
 0x23e   :  { %v2055_v1 = vpop.f32.mrb[56].mxu1 }
 0x23f   :  { %v1392_v21 = vadd.f32 %v2055_v1, %v1739_v22  ;;  %v1383_v35 = vpop.f32.mrb[57].mxu1 }
 0x240   :  { %v1384_v2 = vadd.f32 %v1739_v22, %v1383_v35  ;;  %v2056_v3 = vpop.f32.mrb[58].mxu1 }
 0x241   :  { %v1395_v4 = vadd.f32 %v2056_v3, %v1739_v22  ;;  %v1386_v5 = vpop.f32.mrb[59].mxu1  ;;  %v1424_v12 = vmax.f32 %v1392_v21, 0.0 }
 0x242   :  { %v1387_v7 = vadd.f32 %v1739_v22, %v1386_v5  ;;  %v1422_v13 = vmax.f32 %v1384_v2, 0.0 }
 0x243   :  { %v1425_v25 = vmax.f32 %v1395_v4, 0.0 }
 0x244   :  { %v1423_v14 = vmax.f32 %v1387_v7, 0.0 }
 0x245   :  { %v1435_v45 = vpack.c.bf16 %v1425_v25, %v1424_v12 }
 0x246   :  { %v1434_v19 = vpack.c.bf16 %v1423_v14, %v1422_v13 }
 0x248   :  { %2085 = vmatprep.mubr.bf16.mxu1 %v1434_v19 }
 0x249   :  { %2086 = vmatmul.mubr.bf16.vlgmr.msra.gmra.mrb[64].mxu1 %v1435_v45 }
 0x24e   :  { %v2059_v29 = vpop.f32.mrb[60].mxu1 }
 0x24f   :  { %v1408_v38 = vadd.f32 %v2059_v29, %v1739_v22  ;;  %v1399_v9 = vpop.f32.mrb[61].mxu1 }
 0x250   :  { %v1400_v20 = vadd.f32 %v1739_v22, %v1399_v9  ;;  %v2060_v41 = vpop.f32.mrb[62].mxu1 }
 0x251   :  { %v1411_v23 = vadd.f32 %v2060_v41, %v1739_v22  ;;  %v1402_v16 = vpop.f32.mrb[63].mxu1  ;;  %v1428_v26 = vmax.f32 %v1408_v38, 0.0 }
 0x252   :  { %v1403_v24 = vadd.f32 %v1739_v22, %v1402_v16  ;;  %v1426_v30 = vmax.f32 %v1400_v20, 0.0 }
 0x253   :  { %v1429_v28 = vmax.f32 %v1411_v23, 0.0 }
 0x254   :  { %v1427_v31 = vmax.f32 %v1403_v24, 0.0 }
 0x255   :  { %v1437_v32 = vpack.c.bf16 %v1429_v28, %v1428_v26 }
 0x256   :  { %v1436_v33 = vpack.c.bf16 %v1427_v31, %v1426_v30 }
 0x258   :  { %2089 = vmatprep.mubr.bf16.mxu1 %v1436_v33 }
 0x259   :  { %2090 = vmatmul.mubr.bf16.gmra.mrb[68].mxu1 %v1437_v32 }
 0x2fc   :  { %v2079_v34 = vpop.f32.mrb[64].mxu0 }
 0x2fd   :  { %v1552_v62 = vadd.f32 %v2079_v34, %v1748_v58  ;;  %v1543_v47 = vpop.f32.mrb[65].mxu0 }
 0x2fe   :  { %v1544_v36 = vadd.f32 %v1748_v58, %v1543_v47  ;;  %v2080_v57 = vpop.f32.mrb[66].mxu0 }
 0x2ff   :  { %1608 = vst [vmem:[%s2860_s7 + $0x10] sm:$0xff] %v1552_v62  ;;  %v1555_v17 = vadd.f32 %v2080_v57, %v1748_v58  ;;  %v1546_v22 = vpop.f32.mrb[67].mxu0 }
 0x300   :  { %1606 = vst [vmem:[%s2860_s7] sm:$0xff] %v1544_v36  ;;  %v1547_v43 = vadd.f32 %v1748_v58, %v1546_v22 }
 0x301   :  { %1609 = vst [vmem:[%s2860_s7 + $0x18] sm:$0xff] %v1555_v17 }
 0x302   :  { %1607 = vst [vmem:[%s2860_s7 + $0x8] sm:$0xff] %v1547_v43 }
 0x30c   :  { %v2083_v8 = vpop.f32.mrb[68].mxu0 }
 0x30d   :  { %v1568_v37 = vadd.f32 %v2083_v8, %v1748_v58  ;;  %v1559_v39 = vpop.f32.mrb[69].mxu0 }
 0x30e   :  { %v1560_v40 = vadd.f32 %v1748_v58, %v1559_v39  ;;  %v2084_v42 = vpop.f32.mrb[70].mxu0 }
 0x30f   :  { %1612 = vst [vmem:[%s2860_s7 + $0x30] sm:$0xff] %v1568_v37  ;;  %v1571_v44 = vadd.f32 %v2084_v42, %v1748_v58  ;;  %v1562_v10 = vpop.f32.mrb[71].mxu0 }
 0x310   :  { %1610 = vst [vmem:[%s2860_s7 + $0x20] sm:$0xff] %v1560_v40  ;;  %v1563_v46 = vadd.f32 %v1748_v58, %v1562_v10 }
 0x311   :  { %1613 = vst [vmem:[%s2860_s7 + $0x38] sm:$0xff] %v1571_v44 }
 0x312   :  { %1611 = vst [vmem:[%s2860_s7 + $0x28] sm:$0xff] %v1563_v46 }
 0x31c   :  { %v2087_v61 = vpop.f32.mrb[64].mxu1 }
 0x31d   :  { %v1584_v48 = vadd.f32 %v2087_v61, %v1748_v58  ;;  %v1575_v49 = vpop.f32.mrb[65].mxu1 }
 0x31e   :  { %v1576_v50 = vadd.f32 %v1748_v58, %v1575_v49  ;;  %v2088_v52 = vpop.f32.mrb[66].mxu1 }
 0x31f   :  { %1616 = vst [vmem:[%s2860_s7 + $0x50] sm:$0xff] %v1584_v48  ;;  %v1587_v51 = vadd.f32 %v2088_v52, %v1748_v58  ;;  %v1578_v0 = vpop.f32.mrb[67].mxu1 }
 0x320   :  { %1614 = vst [vmem:[%s2860_s7 + $0x40] sm:$0xff] %v1576_v50  ;;  %v1579_v53 = vadd.f32 %v1748_v58, %v1578_v0 }
 0x321   :  { %1617 = vst [vmem:[%s2860_s7 + $0x58] sm:$0xff] %v1587_v51 }
 0x322   :  { %1615 = vst [vmem:[%s2860_s7 + $0x48] sm:$0xff] %v1579_v53 }
 0x32c   :  { %v2091_v15 = vpop.f32.mrb[68].mxu1 }
 0x32d   :  { %v1600_v54 = vadd.f32 %v2091_v15, %v1748_v58  ;;  %v1591_v6 = vpop.f32.mrb[69].mxu1 }
 0x32e   :  { %v1592_v55 = vadd.f32 %v1748_v58, %v1591_v6  ;;  %v2092_v56 = vpop.f32.mrb[70].mxu1 }
 0x32f   :  { %1620 = vst [vmem:[%s2860_s7 + $0x70] sm:$0xff] %v1600_v54  ;;  %v1603_v59 = vadd.f32 %v2092_v56, %v1748_v58  ;;  %v1594_v27 = vpop.f32.mrb[71].mxu1 }
 0x330   :  { %1618 = vst [vmem:[%s2860_s7 + $0x60] sm:$0xff] %v1592_v55  ;;  %v1595_v11 = vadd.f32 %v1748_v58, %v1594_v27 }
 0x331   :  { %1621 = vst [vmem:[%s2860_s7 + $0x78] sm:$0xff] %v1603_v59 }
 0x332   :  { %1619 = vst [vmem:[%s2860_s7 + $0x68] sm:$0xff] %v1595_v11 }

</bundles_post_ra>
